<compile_context>
chip_gen: v7x
topology: tpu7x:2x2x1
jax: 0.10.0
libtpu: 0.0.40
codegen_flags: <defaults>
</compile_context>

<pallas_src>
import math

import jax
import jax.numpy as jnp
from jax.experimental import pallas as pl
from jax.experimental.pallas import tpu as pltpu

_INV_SQRT2 = 1.0 / math.sqrt(2.0)


def _gelu_exact_f32(h):
    # Exact (erf-based) GELU in f32, matching torch.nn.GELU() default.
    # TODO(synk): a tanh-approx / bf16 GELU would move this off the VALU slot
    # (faster on v6e/v7x) but changes numerics vs. the torch module.
    return 0.5 * h * (1.0 + jax.lax.erf(h * _INV_SQRT2))


def _mlp_kernel_single(x_ref, w1_ref, b1_ref, w2_ref, b2_ref, o_ref):
    """Whole d_ff resident in VMEM: single pass, no accumulator scratch.

    W1/W2 block indices are constant across the grid, so they are DMA'd from
    HBM exactly once for the entire kernel.
    """
    h = jnp.dot(x_ref[...], w1_ref[...], preferred_element_type=jnp.float32)
    h = _gelu_exact_f32(h + b1_ref[...].astype(jnp.float32))
    y = jnp.dot(h.astype(w2_ref.dtype), w2_ref[...],
                preferred_element_type=jnp.float32)
    # TODO(synk): dropout (drop1/drop2) is identity in eval mode; training-mode
    # dropout would use pltpu.prng_seed / pltpu.prng_random_bits.
    o_ref[...] = (y + b2_ref[...].astype(jnp.float32)).astype(o_ref.dtype)


def _mlp_kernel_multi(x_ref, w1_ref, b1_ref, w2_ref, b2_ref, o_ref, acc_ref):
    """d_ff streamed along grid axis 1; f32 accumulator holds (tm, d_model)."""
    j = pl.program_id(1)
    last = pl.num_programs(1) - 1

    h = jnp.dot(x_ref[...], w1_ref[...], preferred_element_type=jnp.float32)
    h = _gelu_exact_f32(h + b1_ref[...].astype(jnp.float32))
    part = jnp.dot(h.astype(w2_ref.dtype), w2_ref[...],
                   preferred_element_type=jnp.float32)

    @pl.when(j == 0)
    def _():
        acc_ref[...] = part                      # straight store, no zero+RMW

    @pl.when(jnp.logical_and(j > 0, j < last))
    def _():
        acc_ref[...] += part

    @pl.when(j == last)
    def _():
        # Fold the final partial product in directly: skips one more full
        # accumulator store+load pass.
        o_ref[...] = (acc_ref[...] + part
                      + b2_ref[...].astype(jnp.float32)).astype(o_ref.dtype)


def _round_up(n, m):
    return ((n + m - 1) // m) * m


def _vmem_limit_bytes():
    """Generation-aware VMEM budget: ~100 MiB on v5e/v6e (128 MiB physical),
    ~54 MiB on v7x (64 MiB physical) or when the chip cannot be queried."""
    cap = None
    try:
        cap = pltpu.get_tpu_info().vmem_capacity_bytes
    except Exception:
        cap = None
    if not cap:
        cap = 64 * 1024 * 1024
    if cap >= 128 * 1024 * 1024:                 # v5e / v6e
        return 100 * 1024 * 1024
    return min(int(cap * 0.85), cap - 4 * 1024 * 1024)   # v7x / unknown


def _footprint_bytes(tm, tff, d_model, in_isz, w_isz, out_isz, multi_pass):
    """Conservative VMEM estimate: all operands double-buffered + f32 acc."""
    b = 2 * tm * d_model * in_isz                # x tile
    b += 2 * d_model * tff * w_isz               # W1 chunk
    b += 2 * tff * d_model * w_isz               # W2 chunk
    b += 2 * (tff + d_model) * w_isz             # biases
    b += 2 * tm * d_model * out_isz              # output tile
    if multi_pass:
        b += tm * d_model * 4                    # f32 accumulator scratch
    return b


def _select_tiles(rows, d_model, d_ff, in_isz, w_isz, out_isz, budget, max_tm):
    # d_ff chunk candidates: full d_ff first (weights resident, DMA'd once),
    # then lane-aligned divisors, descending.
    tff_cands = [d_ff]
    if d_ff % 128 == 0:
        for t in range(d_ff - 128, 127, -128):
            if d_ff % t == 0:
                tff_cands.append(t)

    # Row-tile candidates: multiples of 128 (keeps the MXU M dim busy), big first.
    tm_cap = max(128, min(max_tm, _round_up(rows, 128)))
    tm_cands = list(range(tm_cap, 127, -128))

    for tff in tff_cands:
        multi = (d_ff // tff) > 1
        for tm in tm_cands:
            if _footprint_bytes(tm, tff, d_model, in_isz, w_isz,
                                out_isz, multi) <= budget:
                return tm, tff
    # Nothing fit the conservative estimate: smallest legal tiles, let the
    # compiler try.
    return 128, tff_cands[-1]


def mlp_pallas(x, w1, b1, w2, b2, *, row_tile=None, ff_tile=None,
               max_row_tile=1024):
    """y = GELU(x @ w1 + b1) @ w2 + b2  (dropout identity in eval mode).

    w1: (d_model, d_ff), w2: (d_ff, d_model) — stored pre-transposed relative
    to torch nn.Linear so the kernel does plain row-major x @ W matmuls.
    """
    orig_shape = x.shape
    d_model = orig_shape[-1]
    d_ff = w1.shape[1]

    x2d = x.reshape(-1, d_model)
    rows = x2d.shape[0]

    in_isz = jnp.dtype(x.dtype).itemsize
    w_isz = jnp.dtype(w1.dtype).itemsize
    out_isz = in_isz

    vmem_limit = _vmem_limit_bytes()
    budget = int(vmem_limit * 0.9)

    # Non-lane-aligned d_ff that is too big to keep fully VMEM-resident:
    # zero-pad it to a multiple of 128 (GELU(0) == 0 and 0-rows of W2
    # contribute nothing, so the result is unchanged) so it can be chunked.
    if d_ff % 128 != 0 and _footprint_bytes(
            128, d_ff, d_model, in_isz, w_isz, out_isz, False) > budget:
        d_ff_p = _round_up(d_ff, 128)
        pad = d_ff_p - d_ff
        w1 = jnp.pad(w1, ((0, 0), (0, pad)))
        b1 = jnp.pad(b1, ((0, pad),))
        w2 = jnp.pad(w2, ((0, pad), (0, 0)))
        d_ff = d_ff_p

    tm, tff = _select_tiles(rows, d_model, d_ff, in_isz, w_isz, out_isz,
                            budget, max_row_tile)
    if ff_tile is not None:
        assert d_ff % ff_tile == 0 and (ff_tile == d_ff or ff_tile % 128 == 0)
        tff = ff_tile
    if row_tile is not None:
        assert row_tile % 8 == 0
        tm = row_tile

    grid_i = pl.cdiv(rows, tm)                   # ragged tail -> partial block
    grid_j = d_ff // tff

    b1_2d = b1.reshape(1, d_ff)
    b2_2d = b2.reshape(1, d_model)

    rows_padded = grid_i * tm
    weight_passes = 1 if grid_j == 1 else grid_i
    cost = pl.CostEstimate(
        flops=4 * rows_padded * d_model * d_ff,
        transcendentals=rows_padded * d_ff,
        bytes_accessed=int(
            rows * d_model * (in_isz + out_isz)
            + (w1.size + w2.size + b1.size + b2.size) * w_isz * weight_passes),
    )

    out_shape = jax.ShapeDtypeStruct((rows, d_model), x.dtype)

    if grid_j == 1:
        out = pl.pallas_call(
            _mlp_kernel_single,
            out_shape=out_shape,
            grid_spec=pltpu.PrefetchScalarGridSpec(
                num_scalar_prefetch=0,
                grid=(grid_i,),
                in_specs=[
                    pl.BlockSpec((tm, d_model), lambda i: (i, 0)),    # x tile
                    pl.BlockSpec((d_model, d_ff), lambda i: (0, 0)),  # W1 (resident)
                    pl.BlockSpec((1, d_ff), lambda i: (0, 0)),        # b1
                    pl.BlockSpec((d_ff, d_model), lambda i: (0, 0)),  # W2 (resident)
                    pl.BlockSpec((1, d_model), lambda i: (0, 0)),     # b2
                ],
                out_specs=pl.BlockSpec((tm, d_model), lambda i: (i, 0)),
            ),
            compiler_params=pltpu.CompilerParams(
                dimension_semantics=("parallel",),
                vmem_limit_bytes=vmem_limit,
            ),
            cost_estimate=cost,
        )(x2d, w1, b1_2d, w2, b2_2d)
    else:
        out = pl.pallas_call(
            _mlp_kernel_multi,
            out_shape=out_shape,
            grid_spec=pltpu.PrefetchScalarGridSpec(
                num_scalar_prefetch=0,
                grid=(grid_i, grid_j),
                in_specs=[
                    pl.BlockSpec((tm, d_model), lambda i, j: (i, 0)),   # x tile
                    pl.BlockSpec((d_model, tff), lambda i, j: (0, j)),  # W1 chunk
                    pl.BlockSpec((1, tff), lambda i, j: (0, j)),        # b1 chunk
                    pl.BlockSpec((tff, d_model), lambda i, j: (j, 0)),  # W2 chunk
                    pl.BlockSpec((1, d_model), lambda i, j: (0, 0)),    # b2
                ],
                out_specs=pl.BlockSpec((tm, d_model), lambda i, j: (i, 0)),
                scratch_shapes=[pltpu.VMEM((tm, d_model), jnp.float32)],
            ),
            compiler_params=pltpu.CompilerParams(
                dimension_semantics=("parallel", "arbitrary"),
                vmem_limit_bytes=vmem_limit,
            ),
            cost_estimate=cost,
        )(x2d, w1, b1_2d, w2, b2_2d)

    return out.reshape(orig_shape)


def mlp_reference(x, w1, b1, w2, b2):
    h = x @ w1 + b1
    h = 0.5 * h * (1.0 + jax.lax.erf(h * _INV_SQRT2))
    return h @ w2 + b2


if __name__ == "__main__":
    key = jax.random.PRNGKey(0)
    batch, seq, d_model, d_ff = 2, 16, 128, 256  # small, lane-aligned sizes

    k_x, k_w1, k_b1, k_w2, k_b2 = jax.random.split(key, 5)
    x = jax.random.normal(k_x, (batch, seq, d_model), dtype=jnp.float32)

    # deterministic init mimicking nn.Linear (uniform in +-1/sqrt(fan_in)),
    # stored pre-transposed so the kernel does x @ W
    lim1 = 1.0 / math.sqrt(d_model)
    lim2 = 1.0 / math.sqrt(d_ff)
    w1 = jax.random.uniform(k_w1, (d_model, d_ff), minval=-lim1, maxval=lim1,
                            dtype=jnp.float32)
    b1 = jax.random.uniform(k_b1, (d_ff,), minval=-lim1, maxval=lim1,
                            dtype=jnp.float32)
    w2 = jax.random.uniform(k_w2, (d_ff, d_model), minval=-lim2, maxval=lim2,
                            dtype=jnp.float32)
    b2 = jax.random.uniform(k_b2, (d_model,), minval=-lim2, maxval=lim2,
                            dtype=jnp.float32)

    y_ref = mlp_reference(x, w1, b1, w2, b2)

    # 1) Default (auto) tiling: weights fully VMEM-resident -> single-pass kernel.
    y = jax.block_until_ready(mlp_pallas(x, w1, b1, w2, b2))
    assert y.shape == x.shape
    assert jnp.allclose(y, y_ref, atol=5e-5, rtol=1e-5), "mismatch (single-pass)"

    # 2) Forced small tiles: exercises the streamed-d_ff accumulator kernel,
    #    multiple row tiles and a ragged (partial) last row tile (26 rows, tm=16).
    x_ragged = x[:, :13, :]
    y2 = jax.block_until_ready(
        mlp_pallas(x_ragged, w1, b1, w2, b2, row_tile=16, ff_tile=128))
    y2_ref = mlp_reference(x_ragged, w1, b1, w2, b2)
    assert y2.shape == x_ragged.shape
    assert jnp.allclose(y2, y2_ref, atol=5e-5, rtol=1e-5), "mismatch (multi-pass/ragged)"

    print("KERNEL_OK")
</pallas_src>

<mosaic_0001>
module attributes {stable_mosaic.version = 11 : i64} {
  func.func @_mlp_kernel_single(%arg0: i32, %arg1: memref<128x128xf32, #tpu.memory_space<vmem>>, %arg2: memref<128x256xf32, #tpu.memory_space<vmem>>, %arg3: memref<1x256xf32, #tpu.memory_space<vmem>>, %arg4: memref<256x128xf32, #tpu.memory_space<vmem>>, %arg5: memref<1x128xf32, #tpu.memory_space<vmem>>, %arg6: memref<128x128xf32, #tpu.memory_space<vmem>>) attributes {dimension_semantics = [#tpu.dimension_semantics<parallel>], iteration_bounds = array<i64: 1>, scalar_prefetch = 0 : i64, scratch_operands = 0 : i64, tpu.core_type = #tpu.core_type<tc>, window_params = [{transform_indices = @transform_0, window_bounds = array<i64: 128, 128>}, {pipeline_mode = #tpu.pipeline_mode<synchronous>, transform_indices = @transform_1, window_bounds = array<i64: 128, 256>}, {pipeline_mode = #tpu.pipeline_mode<synchronous>, transform_indices = @transform_2, window_bounds = array<i64: 1, 256>}, {pipeline_mode = #tpu.pipeline_mode<synchronous>, transform_indices = @transform_3, window_bounds = array<i64: 256, 128>}, {pipeline_mode = #tpu.pipeline_mode<synchronous>, transform_indices = @transform_4, window_bounds = array<i64: 1, 128>}, {transform_indices = @transform_5, window_bounds = array<i64: 128, 128>}]} {
    %c0 = arith.constant 0 : index
    %c0_0 = arith.constant 0 : index
    %0 = vector.load %arg1[%c0, %c0_0] : memref<128x128xf32, #tpu.memory_space<vmem>>, vector<128x128xf32>
    %c0_1 = arith.constant 0 : index
    %c0_2 = arith.constant 0 : index
    %1 = vector.load %arg2[%c0_1, %c0_2] : memref<128x256xf32, #tpu.memory_space<vmem>>, vector<128x256xf32>
    %cst = arith.constant dense<0.000000e+00> : vector<128x256xf32>
    %2 = tpu.matmul %0, %1, %cst {dimension_numbers = #tpu.dot_dimension_numbers<[1], [0], [0], [1], [0, 0, 1, 1], [], []>} : vector<128x128xf32>, vector<128x256xf32>, vector<128x256xf32> -> vector<128x256xf32>
    %c0_3 = arith.constant 0 : index
    %c0_4 = arith.constant 0 : index
    %3 = vector.load %arg3[%c0_3, %c0_4] : memref<1x256xf32, #tpu.memory_space<vmem>>, vector<1x256xf32>
    %4 = vector.broadcast %3 : vector<1x256xf32> to vector<128x256xf32>
    %5 = arith.addf %2, %4 : vector<128x256xf32>
    %cst_5 = arith.constant 5.000000e-01 : f32
    %6 = vector.broadcast %cst_5 : f32 to vector<128x256xf32>
    %7 = arith.mulf %6, %5 : vector<128x256xf32>
    %cst_6 = arith.constant 0.707106769 : f32
    %8 = vector.broadcast %cst_6 : f32 to vector<128x256xf32>
    %9 = arith.mulf %5, %8 : vector<128x256xf32>
    %10 = math.erf %9 : vector<128x256xf32>
    %cst_7 = arith.constant 1.000000e+00 : f32
    %11 = vector.broadcast %cst_7 : f32 to vector<128x256xf32>
    %12 = arith.addf %11, %10 : vector<128x256xf32>
    %13 = arith.mulf %7, %12 : vector<128x256xf32>
    %c0_8 = arith.constant 0 : index
    %c0_9 = arith.constant 0 : index
    %14 = vector.load %arg4[%c0_8, %c0_9] : memref<256x128xf32, #tpu.memory_space<vmem>>, vector<256x128xf32>
    %cst_10 = arith.constant dense<0.000000e+00> : vector<128x128xf32>
    %15 = tpu.matmul %13, %14, %cst_10 {dimension_numbers = #tpu.dot_dimension_numbers<[1], [0], [0], [1], [0, 0, 1, 1], [], []>} : vector<128x256xf32>, vector<256x128xf32>, vector<128x128xf32> -> vector<128x128xf32>
    %c0_11 = arith.constant 0 : index
    %c0_12 = arith.constant 0 : index
    %16 = vector.load %arg5[%c0_11, %c0_12] : memref<1x128xf32, #tpu.memory_space<vmem>>, vector<1x128xf32>
    %17 = vector.broadcast %16 : vector<1x128xf32> to vector<128x128xf32>
    %18 = arith.addf %15, %17 : vector<128x128xf32>
    %c0_13 = arith.constant 0 : index
    %c0_14 = arith.constant 0 : index
    %19 = vector.load %arg6[%c0_13, %c0_14] : memref<128x128xf32, #tpu.memory_space<vmem>>, vector<128x128xf32>
    tpu.vector_store %arg6[%c0_13, %c0_14], %18 {strides = array<i32>} : memref<128x128xf32, #tpu.memory_space<vmem>>, vector<128x128xf32>,
    return
  }
  func.func @transform_0(%arg0: i32) -> (i32, i32) {
    %c0_i32 = arith.constant 0 : i32
    %c0_i32_0 = arith.constant 0 : i32
    return %arg0, %c0_i32 : i32, i32
  }
  func.func @transform_1(%arg0: i32) -> (i32, i32) {
    %c0_i32 = arith.constant 0 : i32
    %c0_i32_0 = arith.constant 0 : i32
    %c0_i32_1 = arith.constant 0 : i32
    return %c0_i32, %c0_i32_0 : i32, i32
  }
  func.func @transform_2(%arg0: i32) -> (i32, i32) {
    %c0_i32 = arith.constant 0 : i32
    %c0_i32_0 = arith.constant 0 : i32
    %c0_i32_1 = arith.constant 0 : i32
    return %c0_i32, %c0_i32_0 : i32, i32
  }
  func.func @transform_3(%arg0: i32) -> (i32, i32) {
    %c0_i32 = arith.constant 0 : i32
    %c0_i32_0 = arith.constant 0 : i32
    %c0_i32_1 = arith.constant 0 : i32
    return %c0_i32, %c0_i32_0 : i32, i32
  }
  func.func @transform_4(%arg0: i32) -> (i32, i32) {
    %c0_i32 = arith.constant 0 : i32
    %c0_i32_0 = arith.constant 0 : i32
    %c0_i32_1 = arith.constant 0 : i32
    return %c0_i32, %c0_i32_0 : i32, i32
  }
  func.func @transform_5(%arg0: i32) -> (i32, i32) {
    %c0_i32 = arith.constant 0 : i32
    %c0_i32_0 = arith.constant 0 : i32
    return %arg0, %c0_i32 : i32, i32
  }
}

</mosaic_0001>

<bundles_post_ra>
// kernel: tpu_custom_call.1
= control target key start
LH: loop header
LB: loop body
LE: loop exit
PB: predicated region body
PF: predicated region fallthrough
CT: control target
= control target key end

     0   :  { %10 = vsyncpa [#allocation3], 0  ;;  %s1225_s0 = inlined_call_operand.hbm [shape: f32[32,128], index: 0, kind: input, shape index: {}]   ;;  %s1226_s1 = inlined_call_operand.hbm [shape: f32[128,256], index: 1, kind: input, shape index: {}]   ;;  %s1227_s2 = inlined_call_operand.vmem [shape: f32[1,256], index: 2, kind: input, shape index: {}]   ;;  %s1228_s3 = inlined_call_operand.hbm [shape: f32[256,128], index: 3, kind: input, shape index: {}]   ;;  %s1229_s4 = inlined_call_operand.vmem [shape: f32[1,128], index: 4, kind: input, shape index: {}]   ;;  %s1230_s5 = inlined_call_operand.hbm [shape: f32[32,128], index: 5, kind: output, shape index: {}]  }
   0x1   :  { %11 = vsyncpa [#allocation6], 0 }
   0x2   :  { %12 = vsyncpa [#allocation4], 0 }
   0x3   :  { %17 = vsyncadd [#allocation3], 1536  ;;  %s973_s18 = smov [#allocation5]   ;;  %s879_s22 = scalar_lea.hbm %s1226_s1, 4096 }
   0x4   :  { %s30_s19 = sshll.u32 %s973_s18, 4  ;;  %p880_p0 = scmp.ne.s32.totalorder %s1226_s1, %s879_s22  ;;  %s31_s19 = int_to_ptr.vmem [resolvable:$true] %s30_s19 }
   0x5   :  { %p883_p1 = scmp.lt.u32.totalorder %s879_s22, %s1226_s1 }
   0x7   :  { %p885_p2 = pnand %p883_p1, %p880_p0 }
   0x9   :  { %888 = shalt.err (!%p885_p2)
}
   0xa   :  { %s889_s27 = scalar_lea.vmem %s31_s19, 4096  ;;  %p894_p4 = scmp.lt.s32.totalorder %s31_s19, %s31_s19 }
   0xb   :  { %p890_p3 = scmp.ne.s32.totalorder %s31_s19, %s889_s27  ;;  %p895_p5 = scmp.lt.s32.totalorder %s889_s27, %s889_s27 }
   0xd   :  { %p896_p6 = por %p895_p5, %p894_p4 }
   0xf   :  { %p897_p7 = pnand %p896_p6, %p890_p3 }
  0x11   :  { %900 = shalt.err (!%p897_p7)
}
  0x12   :  { %s974_s28 = smov 256   ;;  %s975_s29 = smov 16  }
  0x13   :  { %36 = dma.hbm_to_vmem [thread:$0]  %s1226_s1, 4096, %s31_s19, [#allocation6], %s974_s28, %s974_s28, %s975_s29  }
  0x14   :  { %s976_s7 = smov [#allocation2]   ;;  %s901_s11 = scalar_lea.hbm %s1225_s0, 512 }
  0x15   :  { %s18_s8 = sshll.u32 %s976_s7, 4  ;;  %p902_p8 = scmp.ne.s32.totalorder %s1225_s0, %s901_s11  ;;  %s19_s8 = int_to_ptr.vmem [resolvable:$true] %s18_s8 }
  0x16   :  { %p905_p9 = scmp.lt.u32.totalorder %s901_s11, %s1225_s0 }
  0x18   :  { %p907_p10 = pnand %p905_p9, %p902_p8 }
  0x1a   :  { %910 = shalt.err (!%p907_p10)
}
  0x1b   :  { %s911_s16 = scalar_lea.vmem %s19_s8, 512  ;;  %s915_s1 = scalar_lea.vmem %s19_s8, 2048 }
  0x1c   :  { %p912_p11 = scmp.ne.s32.totalorder %s19_s8, %s911_s16  ;;  %p916_p12 = scmp.lt.s32.totalorder %s19_s8, %s19_s8 }
  0x1d   :  { %p917_p13 = scmp.lt.s32.totalorder %s915_s1, %s911_s16 }
  0x1f   :  { %p918_p0 = por %p917_p13, %p916_p12 }
  0x21   :  { %p919_p1 = pnand %p918_p0, %p912_p11 }
  0x23   :  { %922 = shalt.err (!%p919_p1)
}
  0x24   :  { %s977_s17 = smov 128   ;;  %s978_s18 = smov 8  }
  0x25   :  { %24 = dma.hbm_to_vmem [thread:$0]  %s1225_s0, 512, %s19_s8, [#allocation3], %s977_s17, %s977_s17, %s978_s18  }
  0x26   :  { %s979_s21 = smov [#allocation7]   ;;  %s923_s25 = scalar_lea.hbm %s1228_s3, 4096 }
  0x27   :  { %s44_s22 = sshll.u32 %s979_s21, 4  ;;  %p924_p2 = scmp.ne.s32.totalorder %s1228_s3, %s923_s25  ;;  %s45_s22 = int_to_ptr.vmem [resolvable:$true] %s44_s22 }
  0x28   :  { %p927_p3 = scmp.lt.u32.totalorder %s923_s25, %s1228_s3 }
  0x2a   :  { %p929_p4 = pnand %p927_p3, %p924_p2 }
  0x2c   :  { %932 = shalt.err (!%p929_p4)
}
  0x2d   :  { %s933_s30 = scalar_lea.vmem %s45_s22, 4096  ;;  %p938_p6 = scmp.lt.s32.totalorder %s45_s22, %s45_s22 }
  0x2e   :  { %p934_p5 = scmp.ne.s32.totalorder %s45_s22, %s933_s30  ;;  %p939_p7 = scmp.lt.s32.totalorder %s933_s30, %s933_s30 }
  0x30   :  { %p940_p8 = por %p939_p7, %p938_p6 }
  0x32   :  { %p941_p9 = pnand %p940_p8, %p934_p5 }
  0x34   :  { %944 = shalt.err (!%p941_p9)
}
  0x35   :  { %50 = dma.hbm_to_vmem [thread:$0]  %s1228_s3, 4096, %s45_s22, [#allocation6], %s977_s17, %s977_s17, %s978_s18  }
  0x36   :  { %967 = dma.done.wait [#allocation3], 2048  }
  0x37   :  { %968 = vsyncadd [#allocation3], 4294965248 }
  0x38   :  { %969 = dma.done.wait [#allocation6], 8192  }
  0x39   :  { %970 = vsyncadd [#allocation6], 4294959104  ;;  %v980_v0 = vmov 0.0   ;;  %v79_v1 = vld [vmem:[#allocation5 + $0x8] sm:$0xff]  ;;  %v81_v2 = vld [vmem:[#allocation5 + $0x18] sm:$0xff] }
  0x3a   :  { %186 = vmatprep.mubr.f32.mxu0 %v980_v0  ;;  %v78_v3 = vld [vmem:[#allocation5] sm:$0xff]  ;;  %v742_v4 = vpack.c.bf16 %v81_v2, %v79_v1  ;;  %v80_v5 = vld [vmem:[#allocation5 + $0x10] sm:$0xff]  ;;  %v83_v6 = vld [vmem:[#allocation5 + $0x28] sm:$0xff] }
  0x3b   :  { %v85_v7 = vld [vmem:[#allocation5 + $0x38] sm:$0xff]  ;;  %v744_v8 = vpack.c.bf16 %v80_v5, %v78_v3  ;;  %v82_v10 = vld [vmem:[#allocation5 + $0x20] sm:$0xff]  ;;  %v84_v11 = vld [vmem:[#allocation5 + $0x30] sm:$0xff] }
  0x3c   :  { %v746_v9 = vpack.c.bf16 %v85_v7, %v83_v6  ;;  %v87_v12 = vld [vmem:[#allocation5 + $0x48] sm:$0xff]  ;;  %743 = vmatprep.subr.bf16.mxu0 %v742_v4  ;;  %v89_v13 = vld [vmem:[#allocation5 + $0x58] sm:$0xff]  ;;  %v748_v14 = vpack.c.bf16 %v84_v11, %v82_v10  ;;  %v86_v16 = vld [vmem:[#allocation5 + $0x40] sm:$0xff] }
  0x3d   :  { %745 = vmatpush1.bf16.msra.mxu0 %v744_v8  ;;  %v750_v15 = vpack.c.bf16 %v89_v13, %v87_v12  ;;  %v88_v17 = vld [vmem:[#allocation5 + $0x50] sm:$0xff]  ;;  %v91_v18 = vld [vmem:[#allocation5 + $0x68] sm:$0xff]  ;;  %v93_v19 = vld [vmem:[#allocation5 + $0x78] sm:$0xff] }
  0x3e   :  { %747 = vmatprep.subr.bf16.mxu0 %v746_v9  ;;  %v752_v20 = vpack.c.bf16 %v88_v17, %v86_v16  ;;  %v754_v21 = vpack.c.bf16 %v93_v19, %v91_v18  ;;  %v90_v22 = vld [vmem:[#allocation5 + $0x60] sm:$0xff]  ;;  %v92_v23 = vld [vmem:[#allocation5 + $0x70] sm:$0xff]  ;;  %v95_v24 = vld [vmem:[#allocation5 + $0x88] sm:$0xff] }
  0x3f   :  { %v97_v25 = vld [vmem:[#allocation5 + $0x98] sm:$0xff]  ;;  %v756_v26 = vpack.c.bf16 %v92_v23, %v90_v22  ;;  %v94_v28 = vld [vmem:[#allocation5 + $0x80] sm:$0xff]  ;;  %v96_v29 = vld [vmem:[#allocation5 + $0x90] sm:$0xff] }
  0x40   :  { %v758_v27 = vpack.c.bf16 %v97_v25, %v95_v24  ;;  %v99_v30 = vld [vmem:[#allocation5 + $0xa8] sm:$0xff]  ;;  %v101_v31 = vld [vmem:[#allocation5 + $0xb8] sm:$0xff]  ;;  %v98_v32 = vld [vmem:[#allocation5 + $0xa0] sm:$0xff]  ;;  %v760_v34 = vpack.c.bf16 %v96_v29, %v94_v28 }
  0x41   :  { %749 = vmatpush1.bf16.msra.mxu0 %v748_v14  ;;  %v100_v33 = vld [vmem:[#allocation5 + $0xb0] sm:$0xff]  ;;  %v103_v35 = vld [vmem:[#allocation5 + $0xc8] sm:$0xff]  ;;  %v105_v36 = vld [vmem:[#allocation5 + $0xd8] sm:$0xff]  ;;  %v762_v40 = vpack.c.bf16 %v101_v31, %v99_v30 }
  0x42   :  { %751 = vmatprep.subr.bf16.mxu0 %v750_v15  ;;  %v459_v37 = vld [vmem:[#allocation7 + $0x80] sm:$0xff]  ;;  %v460_v38 = vld [vmem:[#allocation7 + $0x88] sm:$0xff]  ;;  %v461_v43 = vld [vmem:[#allocation7 + $0x90] sm:$0xff]  ;;  %v764_v51 = vpack.c.bf16 %v100_v33, %v98_v32  ;;  %v766_v54 = vpack.c.bf16 %v105_v36, %v103_v35 }
  0x43   :  { %v443_v39 = vld [vmem:[#allocation7] sm:$0xff]  ;;  %v774_v41 = vpack.c.bf16 %v460_v38, %v459_v37  ;;  %v444_v42 = vld [vmem:[#allocation7 + $0x8] sm:$0xff]  ;;  %v462_v44 = vld [vmem:[#allocation7 + $0x98] sm:$0xff] }
  0x44   :  { %v776_v45 = vpack.c.bf16 %v444_v42, %v443_v39  ;;  %v778_v46 = vpack.c.bf16 %v462_v44, %v461_v43  ;;  %v445_v47 = vld [vmem:[#allocation7 + $0x10] sm:$0xff]  ;;  %v446_v48 = vld [vmem:[#allocation7 + $0x18] sm:$0xff]  ;;  %v463_v49 = vld [vmem:[#allocation7 + $0xa0] sm:$0xff] }
  0x45   :  { %753 = vmatpush1.bf16.msra.mxu0 %v752_v20  ;;  %775 = vmatprep.subr.bf16.mxu1 %v774_v41  ;;  %v464_v50 = vld [vmem:[#allocation7 + $0xa8] sm:$0xff]  ;;  %v102_v52 = vld [vmem:[#allocation5 + $0xc0] sm:$0xff]  ;;  %v780_v53 = vpack.c.bf16 %v446_v48, %v445_v47  ;;  %v104_v55 = vld [vmem:[#allocation5 + $0xd0] sm:$0xff] }
  0x46   :  { %755 = vmatprep.subr.bf16.mxu0 %v754_v21  ;;  %777 = vmatpush3.bf16.msra.mxu1 %v776_v45  ;;  %v782_v56 = vpack.c.bf16 %v464_v50, %v463_v49  ;;  %v447_v57 = vld [vmem:[#allocation7 + $0x20] sm:$0xff]  ;;  %v448_v58 = vld [vmem:[#allocation7 + $0x28] sm:$0xff]  ;;  %v109_v60 = vld [vmem:[#allocation5 + $0xf8] sm:$0xff]  ;;  %v768_v61 = vpack.c.bf16 %v104_v55, %v102_v52  ;;  %v112_v49 = vlaneseq }
  0x47   :  { %779 = vmatprep.subr.bf16.mxu1 %v778_v46  ;;  %v107_v59 = vld [vmem:[#allocation5 + $0xe8] sm:$0xff]  ;;  %v784_v62 = vpack.c.bf16 %v448_v58, %v447_v57  ;;  %v106_v1 = vld [vmem:[#allocation5 + $0xe0] sm:$0xff]  ;;  %v108_v2 = vld [vmem:[#allocation5 + $0xf0] sm:$0xff] }
  0x48   :  { %v770_v63 = vpack.c.bf16 %v109_v60, %v107_v59  ;;  %v772_v3 = vpack.c.bf16 %v108_v2, %v106_v1  ;;  %v62_v4 = vld [vmem:[#allocation2] sm:$0xff]  ;;  %v63_v5 = vld [vmem:[#allocation2 + $0x8] sm:$0xff]  ;;  %v64_v6 = vld [vmem:[#allocation2 + $0x10] sm:$0xff]  ;;  %v113_v50 = vshrl.u32 %v112_v49, 7 }
  0x49   :  { %757 = vmatpush1.bf16.msra.mxu0 %v756_v26  ;;  %v65_v7 = vld [vmem:[#allocation2 + $0x18] sm:$0xff]  ;;  %v66_v8 = vld [vmem:[#allocation2 + $0x20] sm:$0xff]  ;;  %v67_v9 = vld [vmem:[#allocation2 + $0x28] sm:$0xff] }
  0x4a   :  { %759 = vmatprep.subr.bf16.mxu0 %v758_v27  ;;  %781 = vmatpush3.bf16.msra.mxu1 %v780_v53  ;;  %v68_v10 = vld [vmem:[#allocation2 + $0x30] sm:$0xff]  ;;  %v69_v11 = vld [vmem:[#allocation2 + $0x38] sm:$0xff]  ;;  %v70_v12 = vld [vmem:[#allocation2 + $0x40] sm:$0xff]  ;;  %v118_v53 = vsub.s32 1, %v113_v50 }
  0x4b   :  { %783 = vmatprep.subr.bf16.mxu1 %v782_v56  ;;  %v71_v13 = vld [vmem:[#allocation2 + $0x48] sm:$0xff]  ;;  %v72_v14 = vld [vmem:[#allocation2 + $0x50] sm:$0xff]  ;;  %v73_v15 = vld [vmem:[#allocation2 + $0x58] sm:$0xff] }
  0x4c   :  { %v74_v16 = vld [vmem:[#allocation2 + $0x60] sm:$0xff]  ;;  %v75_v17 = vld [vmem:[#allocation2 + $0x68] sm:$0xff]  ;;  %v76_v18 = vld [vmem:[#allocation2 + $0x70] sm:$0xff] }
  0x4d   :  { %761 = vmatpush1.bf16.msra.mxu0 %v760_v34  ;;  %v77_v19 = vld [vmem:[#allocation2 + $0x78] sm:$0xff]  ;;  %v465_v20 = vld [vmem:[#allocation7 + $0xb0] sm:$0xff]  ;;  %v467_v26 = vld [vmem:[#allocation7 + $0xc0] sm:$0xff] }
  0x4e   :  { %763 = vmatprep.subr.bf16.mxu0 %v762_v40  ;;  %785 = vmatpush3.bf16.msra.mxu1 %v784_v62  ;;  %v466_v21 = vld [vmem:[#allocation7 + $0xb8] sm:$0xff]  ;;  %v449_v23 = vld [vmem:[#allocation7 + $0x30] sm:$0xff]  ;;  %v468_v27 = vld [vmem:[#allocation7 + $0xc8] sm:$0xff] }
  0x4f   :  { %v786_v22 = vpack.c.bf16 %v466_v21, %v465_v20  ;;  %v450_v24 = vld [vmem:[#allocation7 + $0x38] sm:$0xff]  ;;  %v790_v28 = vpack.c.bf16 %v468_v27, %v467_v26  ;;  %v451_v29 = vld [vmem:[#allocation7 + $0x40] sm:$0xff]  ;;  %v452_v30 = vld [vmem:[#allocation7 + $0x48] sm:$0xff] }
  0x50   :  { %v788_v25 = vpack.c.bf16 %v450_v24, %v449_v23  ;;  %v792_v31 = vpack.c.bf16 %v452_v30, %v451_v29  ;;  %v469_v32 = vld [vmem:[#allocation7 + $0xd0] sm:$0xff]  ;;  %v454_v35 = vld [vmem:[#allocation7 + $0x58] sm:$0xff]  ;;  %v471_v37 = vld [vmem:[#allocation7 + $0xe0] sm:$0xff] }
  0x51   :  { %765 = vmatpush1.bf16.msra.mxu0 %v764_v51  ;;  %787 = vmatprep.subr.bf16.mxu1 %v786_v22  ;;  %v453_v34 = vld [vmem:[#allocation7 + $0x50] sm:$0xff]  ;;  %v472_v38 = vld [vmem:[#allocation7 + $0xe8] sm:$0xff]  ;;  %v455_v40 = vld [vmem:[#allocation7 + $0x60] sm:$0xff]  ;;  %v114_v51 = vsub.s32 0, %v113_v50 }
  0x52   :  { %767 = vmatprep.subr.bf16.mxu0 %v766_v54  ;;  %789 = vmatpush3.bf16.msra.mxu1 %v788_v25  ;;  %v796_v36 = vpack.c.bf16 %v454_v35, %v453_v34  ;;  %v798_v39 = vpack.c.bf16 %v472_v38, %v471_v37  ;;  %v456_v41 = vld [vmem:[#allocation7 + $0x68] sm:$0xff]  ;;  %v473_v43 = vld [vmem:[#allocation7 + $0xf0] sm:$0xff]  ;;  %v474_v44 = vld [vmem:[#allocation7 + $0xf8] sm:$0xff] }
  0x53   :  { %791 = vmatprep.subr.bf16.mxu1 %v790_v28  ;;  %v800_v42 = vpack.c.bf16 %v456_v41, %v455_v40  ;;  %v802_v45 = vpack.c.bf16 %v474_v44, %v473_v43  ;;  %v457_v46 = vld [vmem:[#allocation7 + $0x70] sm:$0xff]  ;;  %v458_v47 = vld [vmem:[#allocation7 + $0x78] sm:$0xff]  ;;  %v110_v52 = vld [vmem:[%s1227_s2] sm:$0x3] }
  0x54   :  { %v804_v48 = vpack.c.bf16 %v458_v47, %v457_v46  ;;  %v1073_v54 = vrot.slane %v110_v52, %v114_v51  ;;  %v1075_v55 = vrot.slane %v110_v52, %v118_v53 }
  0x55   :  { %769 = vmatpush1.bf16.msra.mxu0 %v768_v61 }
  0x56   :  { %771 = vmatprep.subr.bf16.mxu0 %v770_v63  ;;  %793 = vmatpush3.bf16.msra.mxu1 %v792_v31 }
  0x59   :  { %773 = vmatpush1.bf16.msra.mxu0 %v772_v3 }
  0x5c   :  { %187 = vmatmul.mubr.f32.vlgmr.msra.gmra.mrb[0].mxu0 %v62_v4 }
  0x5d   :  { %192 = vmatprep.mubr.f32.mxu0 %v980_v0 }
  0x60   :  { %193 = vmatmul.mubr.f32.gmra.mrb[2].mxu0 %v63_v5 }
  0x61   :  { %198 = vmatprep.mubr.f32.mxu0 %v980_v0 }
  0x64   :  { %199 = vmatmul.mubr.f32.gmra.mrb[4].mxu0 %v64_v6 }
  0x65   :  { %204 = vmatprep.mubr.f32.mxu0 %v980_v0 }
  0x68   :  { %205 = vmatmul.mubr.f32.gmra.mrb[6].mxu0 %v65_v7 }
  0x69   :  { %210 = vmatprep.mubr.f32.mxu0 %v980_v0 }
  0x6c   :  { %211 = vmatmul.mubr.f32.gmra.mrb[8].mxu0 %v66_v8 }
  0x6d   :  { %216 = vmatprep.mubr.f32.mxu0 %v980_v0 }
  0x70   :  { %217 = vmatmul.mubr.f32.gmra.mrb[10].mxu0 %v67_v9 }
  0x71   :  { %222 = vmatprep.mubr.f32.mxu0 %v980_v0 }
  0x74   :  { %223 = vmatmul.mubr.f32.gmra.mrb[12].mxu0 %v68_v10 }
  0x75   :  { %228 = vmatprep.mubr.f32.mxu0 %v980_v0 }
  0x78   :  { %229 = vmatmul.mubr.f32.gmra.mrb[14].mxu0 %v69_v11 }
  0x79   :  { %234 = vmatprep.mubr.f32.mxu0 %v980_v0 }
  0x7c   :  { %235 = vmatmul.mubr.f32.gmra.mrb[16].mxu0 %v70_v12 }
  0x7d   :  { %240 = vmatprep.mubr.f32.mxu0 %v980_v0 }
  0x80   :  { %241 = vmatmul.mubr.f32.gmra.mrb[18].mxu0 %v71_v13 }
  0x81   :  { %246 = vmatprep.mubr.f32.mxu0 %v980_v0 }
  0x84   :  { %247 = vmatmul.mubr.f32.gmra.mrb[20].mxu0 %v72_v14 }
  0x85   :  { %252 = vmatprep.mubr.f32.mxu0 %v980_v0 }
  0x88   :  { %253 = vmatmul.mubr.f32.gmra.mrb[22].mxu0 %v73_v15 }
  0x89   :  { %258 = vmatprep.mubr.f32.mxu0 %v980_v0 }
  0x8c   :  { %259 = vmatmul.mubr.f32.gmra.mrb[24].mxu0 %v74_v16 }
  0x8d   :  { %264 = vmatprep.mubr.f32.mxu0 %v980_v0 }
  0x90   :  { %265 = vmatmul.mubr.f32.gmra.mrb[26].mxu0 %v75_v17 }
  0x91   :  { %270 = vmatprep.mubr.f32.mxu0 %v980_v0 }
  0x94   :  { %271 = vmatmul.mubr.f32.gmra.mrb[28].mxu0 %v76_v18 }
  0x95   :  { %276 = vmatprep.mubr.f32.mxu0 %v980_v0  ;;  %v470_v0 = vld [vmem:[#allocation7 + $0xd8] sm:$0xff] }
  0x96   :  { %v794_v33 = vpack.c.bf16 %v470_v0, %v469_v32 }
  0x98   :  { %277 = vmatmul.mubr.f32.gmra.mrb[30].mxu0 %v77_v19  ;;  %795 = vmatprep.subr.bf16.mxu1 %v794_v33 }
  0x99   :  { %797 = vmatpush3.bf16.msra.mxu1 %v796_v36 }
  0x9a   :  { %799 = vmatprep.subr.bf16.mxu1 %v798_v39 }
  0x9d   :  { %801 = vmatpush3.bf16.msra.mxu1 %v800_v42 }
  0x9e   :  { %803 = vmatprep.subr.bf16.mxu1 %v802_v45 }
  0xa1   :  { %805 = vmatpush3.bf16.msra.mxu1 %v804_v48 }
 0x12f   :  { %v188_v56 = vpop.f32.mrb[0].mxu0 }
 0x130   :  { %v189_v57 = vadd.f32 %v188_v56, %v1073_v54  ;;  %v190_v58 = vpop.f32.mrb[1].mxu0 }
 0x131   :  { %v191_v59 = vadd.f32 %v190_v58, %v1075_v55 }
 0x132   :  { %v315_v60 = vmul.f32 0.70710677, %v189_v57  ;;  %v283_v25 = vmul.f32 0.5, %v189_v57 }
 0x133   :  { %v316_v61 = vmul.f32 0.70710677, %v191_v59  ;;  %v194_v62 = vpop.f32.mrb[2].mxu0  ;;  %v284_v23 = vmul.f32 0.5, %v191_v59 }
 0x134   :  { %815 = verf.f32 %v315_v60  ;;  %v195_v63 = vadd.f32 %v194_v62, %v1073_v54  ;;  %v196_v1 = vpop.f32.mrb[3].mxu0 }
 0x135   :  { %817 = verf.f32 %v316_v61  ;;  %v197_v2 = vadd.f32 %v196_v1, %v1075_v55 }
 0x136   :  { %v317_v3 = vmul.f32 0.70710677, %v195_v63  ;;  %v285_v38 = vmul.f32 0.5, %v195_v63 }
 0x137   :  { %v318_v4 = vmul.f32 0.70710677, %v197_v2  ;;  %v200_v5 = vpop.f32.mrb[4].mxu0  ;;  %v286_v34 = vmul.f32 0.5, %v197_v2 }
 0x138   :  { %819 = verf.f32 %v317_v3  ;;  %v201_v6 = vadd.f32 %v200_v5, %v1073_v54  ;;  %v202_v7 = vpop.f32.mrb[5].mxu0 }
 0x139   :  { %821 = verf.f32 %v318_v4  ;;  %v203_v8 = vadd.f32 %v202_v7, %v1075_v55 }
 0x13a   :  { %v319_v9 = vmul.f32 0.70710677, %v201_v6  ;;  %v287_v52 = vmul.f32 0.5, %v201_v6 }
 0x13b   :  { %v320_v10 = vmul.f32 0.70710677, %v203_v8  ;;  %v206_v11 = vpop.f32.mrb[6].mxu0  ;;  %v288_v48 = vmul.f32 0.5, %v203_v8 }
 0x13c   :  { %823 = verf.f32 %v319_v9  ;;  %v1084_v12 = vadd.f32 %v206_v11, %v1073_v54  ;;  %v208_v13 = vpop.f32.mrb[7].mxu0 }
 0x13d   :  { %825 = verf.f32 %v320_v10  ;;  %v209_v14 = vadd.f32 %v208_v13, %v1075_v55 }
 0x13e   :  { %v816_v15 = vpop.eup %815  ;;  %v321_v16 = vmul.f32 0.70710677, %v1084_v12  ;;  %v289_v5 = vmul.f32 0.5, %v1084_v12 }
 0x13f   :  { %v818_v17 = vpop.eup %817  ;;  %v379_v18 = vadd.f32 1.0, %v816_v15  ;;  %v322_v19 = vmul.f32 0.70710677, %v209_v14  ;;  %v212_v20 = vpop.f32.mrb[8].mxu0  ;;  %v290_v1 = vmul.f32 0.5, %v209_v14 }
 0x140   :  { %827 = verf.f32 %v321_v16  ;;  %v1089_v21 = vadd.f32 %v212_v20, %v1073_v54  ;;  %v214_v22 = vpop.f32.mrb[9].mxu0  ;;  %v380_v24 = vadd.f32 1.0, %v818_v17 }
 0x141   :  { %829 = verf.f32 %v322_v19  ;;  %v1092_v26 = vadd.f32 %v214_v22, %v1075_v55  ;;  %v411_v33 = vmul.f32 %v379_v18, %v283_v25 }
 0x142   :  { %v820_v27 = vpop.eup %819  ;;  %v323_v28 = vmul.f32 0.70710677, %v1089_v21  ;;  %v412_v29 = vmul.f32 %v380_v24, %v284_v23  ;;  %v291_v19 = vmul.f32 0.5, %v1089_v21 }
 0x143   :  { %v822_v30 = vpop.eup %821  ;;  %v381_v31 = vadd.f32 1.0, %v820_v27  ;;  %v324_v32 = vmul.f32 0.70710677, %v1092_v26  ;;  %v218_v0 = vpop.f32.mrb[10].mxu0  ;;  %v292_v16 = vmul.f32 0.5, %v1092_v26 }
 0x144   :  { %v382_v35 = vadd.f32 1.0, %v822_v30  ;;  %831 = verf.f32 %v323_v28  ;;  %v1097_v36 = vadd.f32 %v218_v0, %v1073_v54  ;;  %v220_v37 = vpop.f32.mrb[11].mxu0  ;;  %546 = vmatprep.mubr.f32.mxu1 %v412_v29 }
 0x145   :  { %833 = verf.f32 %v324_v32  ;;  %v1100_v39 = vadd.f32 %v220_v37, %v1075_v55  ;;  %547 = vmatmul.mubr.f32.vlgmr.msra.gmra.mrb[0].mxu1 %v411_v33  ;;  %v413_v47 = vmul.f32 %v381_v31, %v285_v38 }
 0x146   :  { %v824_v40 = vpop.eup %823  ;;  %v325_v41 = vmul.f32 0.70710677, %v1097_v36  ;;  %v414_v42 = vmul.f32 %v382_v35, %v286_v34  ;;  %v293_v0 = vmul.f32 0.5, %v1097_v36 }
 0x147   :  { %v826_v43 = vpop.eup %825  ;;  %v383_v44 = vadd.f32 1.0, %v824_v40  ;;  %v326_v45 = vmul.f32 0.70710677, %v1100_v39  ;;  %v224_v46 = vpop.f32.mrb[12].mxu0  ;;  %v294_v30 = vmul.f32 0.5, %v1100_v39 }
 0x148   :  { %v384_v49 = vadd.f32 1.0, %v826_v43  ;;  %835 = verf.f32 %v325_v41  ;;  %v1105_v50 = vadd.f32 %v224_v46, %v1073_v54  ;;  %v226_v51 = vpop.f32.mrb[13].mxu0  ;;  %551 = vmatprep.mubr.f32.mxu1 %v414_v42 }
 0x149   :  { %837 = verf.f32 %v326_v45  ;;  %v1108_v53 = vadd.f32 %v226_v51, %v1075_v55  ;;  %552 = vmatmul.mubr.f32.gmra.mrb[2].mxu1 %v413_v47  ;;  %v415_v63 = vmul.f32 %v383_v44, %v287_v52 }
 0x14a   :  { %v828_v56 = vpop.eup %827  ;;  %v327_v57 = vmul.f32 0.70710677, %v1105_v50  ;;  %v416_v58 = vmul.f32 %v384_v49, %v288_v48  ;;  %v295_v46 = vmul.f32 0.5, %v1105_v50 }
 0x14b   :  { %v830_v59 = vpop.eup %829  ;;  %v385_v60 = vadd.f32 1.0, %v828_v56  ;;  %v328_v61 = vmul.f32 0.70710677, %v1108_v53  ;;  %v230_v62 = vpop.f32.mrb[14].mxu0  ;;  %v296_v43 = vmul.f32 0.5, %v1108_v53 }
 0x14c   :  { %v386_v2 = vadd.f32 1.0, %v830_v59  ;;  %839 = verf.f32 %v327_v57  ;;  %v1113_v3 = vadd.f32 %v230_v62, %v1073_v54  ;;  %v232_v4 = vpop.f32.mrb[15].mxu0  ;;  %556 = vmatprep.mubr.f32.mxu1 %v416_v58 }
 0x14d   :  { %841 = verf.f32 %v328_v61  ;;  %v1117_v6 = vadd.f32 %v232_v4, %v1075_v55  ;;  %557 = vmatmul.mubr.f32.gmra.mrb[4].mxu1 %v415_v63  ;;  %v417_v15 = vmul.f32 %v385_v60, %v289_v5 }
 0x14e   :  { %v832_v7 = vpop.eup %831  ;;  %v329_v8 = vmul.f32 0.70710677, %v1113_v3  ;;  %v418_v9 = vmul.f32 %v386_v2, %v290_v1  ;;  %v297_v62 = vmul.f32 0.5, %v1113_v3 }
 0x14f   :  { %v834_v10 = vpop.eup %833  ;;  %v387_v11 = vadd.f32 1.0, %v832_v7  ;;  %v330_v13 = vmul.f32 0.70710677, %v1117_v6  ;;  %v236_v14 = vpop.f32.mrb[16].mxu0  ;;  %v298_v59 = vmul.f32 0.5, %v1117_v6 }
 0x150   :  { %v388_v17 = vadd.f32 1.0, %v834_v10  ;;  %843 = verf.f32 %v329_v8  ;;  %v1123_v12 = vadd.f32 %v236_v14, %v1073_v54  ;;  %v238_v18 = vpop.f32.mrb[17].mxu0  ;;  %561 = vmatprep.mubr.f32.mxu1 %v418_v9 }
 0x151   :  { %845 = verf.f32 %v330_v13  ;;  %v1127_v20 = vadd.f32 %v238_v18, %v1075_v55  ;;  %562 = vmatmul.mubr.f32.gmra.mrb[6].mxu1 %v417_v15  ;;  %v419_v29 = vmul.f32 %v387_v11, %v291_v19 }
 0x152   :  { %v836_v22 = vpop.eup %835  ;;  %v331_v23 = vmul.f32 0.70710677, %v1123_v12  ;;  %v420_v24 = vmul.f32 %v388_v17, %v292_v16  ;;  %v299_v14 = vmul.f32 0.5, %v1123_v12 }
 0x153   :  { %v838_v25 = vpop.eup %837  ;;  %v389_v26 = vadd.f32 1.0, %v836_v22  ;;  %v332_v27 = vmul.f32 0.70710677, %v1127_v20  ;;  %v242_v28 = vpop.f32.mrb[18].mxu0  ;;  %v300_v10 = vmul.f32 0.5, %v1127_v20 }
 0x154   :  { %v390_v31 = vadd.f32 1.0, %v838_v25  ;;  %847 = verf.f32 %v331_v23  ;;  %v1133_v21 = vadd.f32 %v242_v28, %v1073_v54  ;;  %v244_v32 = vpop.f32.mrb[19].mxu0  ;;  %566 = vmatprep.mubr.f32.mxu1 %v420_v24 }
 0x155   :  { %849 = verf.f32 %v332_v27  ;;  %v1137_v33 = vadd.f32 %v244_v32, %v1075_v55  ;;  %567 = vmatmul.mubr.f32.gmra.mrb[8].mxu1 %v419_v29  ;;  %v421_v42 = vmul.f32 %v389_v26, %v293_v0 }
 0x156   :  { %v840_v34 = vpop.eup %839  ;;  %v333_v35 = vmul.f32 0.70710677, %v1133_v21  ;;  %v422_v37 = vmul.f32 %v390_v31, %v294_v30  ;;  %v301_v28 = vmul.f32 0.5, %v1133_v21 }
 0x157   :  { %v842_v38 = vpop.eup %841  ;;  %v391_v39 = vadd.f32 1.0, %v840_v34  ;;  %v334_v40 = vmul.f32 0.70710677, %v1137_v33  ;;  %v248_v41 = vpop.f32.mrb[20].mxu0  ;;  %v302_v25 = vmul.f32 0.5, %v1137_v33 }
 0x158   :  { %v392_v44 = vadd.f32 1.0, %v842_v38  ;;  %851 = verf.f32 %v333_v35  ;;  %v1143_v36 = vadd.f32 %v248_v41, %v1073_v54  ;;  %v250_v45 = vpop.f32.mrb[21].mxu0  ;;  %571 = vmatprep.mubr.f32.mxu1 %v422_v37 }
 0x159   :  { %853 = verf.f32 %v334_v40  ;;  %v1147_v47 = vadd.f32 %v250_v45, %v1075_v55  ;;  %572 = vmatmul.mubr.f32.gmra.mrb[10].mxu1 %v421_v42  ;;  %v423_v58 = vmul.f32 %v391_v39, %v295_v46 }
 0x15a   :  { %v844_v48 = vpop.eup %843  ;;  %v335_v49 = vmul.f32 0.70710677, %v1143_v36  ;;  %v424_v51 = vmul.f32 %v392_v44, %v296_v43  ;;  %v303_v41 = vmul.f32 0.5, %v1143_v36 }
 0x15b   :  { %v846_v52 = vpop.eup %845  ;;  %v393_v53 = vadd.f32 1.0, %v844_v48  ;;  %v336_v56 = vmul.f32 0.70710677, %v1147_v47  ;;  %v254_v57 = vpop.f32.mrb[22].mxu0  ;;  %v304_v38 = vmul.f32 0.5, %v1147_v47 }
 0x15c   :  { %v394_v60 = vadd.f32 1.0, %v846_v52  ;;  %855 = verf.f32 %v335_v49  ;;  %v1153_v50 = vadd.f32 %v254_v57, %v1073_v54  ;;  %v256_v61 = vpop.f32.mrb[23].mxu0  ;;  %576 = vmatprep.mubr.f32.mxu1 %v424_v51 }
 0x15d   :  { %857 = verf.f32 %v336_v56  ;;  %v1157_v63 = vadd.f32 %v256_v61, %v1075_v55  ;;  %577 = vmatmul.mubr.f32.gmra.mrb[12].mxu1 %v423_v58  ;;  %v425_v9 = vmul.f32 %v393_v53, %v297_v62 }
 0x15e   :  { %v848_v1 = vpop.eup %847  ;;  %v337_v2 = vmul.f32 0.70710677, %v1153_v50  ;;  %v426_v4 = vmul.f32 %v394_v60, %v298_v59  ;;  %v305_v36 = vmul.f32 0.5, %v1153_v50 }
 0x15f   :  { %v850_v5 = vpop.eup %849  ;;  %v395_v6 = vadd.f32 1.0, %v848_v1  ;;  %v338_v7 = vmul.f32 0.70710677, %v1157_v63  ;;  %v260_v8 = vpop.f32.mrb[24].mxu0  ;;  %v306_v52 = vmul.f32 0.5, %v1157_v63 }
 0x160   :  { %v396_v11 = vadd.f32 1.0, %v850_v5  ;;  %859 = verf.f32 %v337_v2  ;;  %v1163_v3 = vadd.f32 %v260_v8, %v1073_v54  ;;  %v262_v13 = vpop.f32.mrb[25].mxu0  ;;  %581 = vmatprep.mubr.f32.mxu1 %v426_v4 }
 0x161   :  { %861 = verf.f32 %v338_v7  ;;  %v1167_v15 = vadd.f32 %v262_v13, %v1075_v55  ;;  %582 = vmatmul.mubr.f32.gmra.mrb[14].mxu1 %v425_v9  ;;  %v427_v24 = vmul.f32 %v395_v6, %v299_v14 }
 0x162   :  { %v852_v16 = vpop.eup %851  ;;  %v339_v17 = vmul.f32 0.70710677, %v1163_v3  ;;  %v428_v18 = vmul.f32 %v396_v11, %v300_v10 }
 0x163   :  { %v854_v19 = vpop.eup %853  ;;  %v397_v20 = vadd.f32 1.0, %v852_v16  ;;  %v340_v22 = vmul.f32 0.70710677, %v1167_v15  ;;  %v266_v23 = vpop.f32.mrb[26].mxu0  ;;  %v308_v63 = vmul.f32 0.5, %v1167_v15 }
 0x164   :  { %v398_v26 = vadd.f32 1.0, %v854_v19  ;;  %863 = verf.f32 %v339_v17  ;;  %v1173_v12 = vadd.f32 %v266_v23, %v1073_v54  ;;  %v268_v27 = vpop.f32.mrb[27].mxu0  ;;  %586 = vmatprep.mubr.f32.mxu1 %v428_v18 }
 0x165   :  { %865 = verf.f32 %v340_v22  ;;  %v269_v29 = vadd.f32 %v268_v27, %v1075_v55  ;;  %587 = vmatmul.mubr.f32.gmra.mrb[16].mxu1 %v427_v24  ;;  %v429_v37 = vmul.f32 %v397_v20, %v301_v28 }
 0x166   :  { %v856_v30 = vpop.eup %855  ;;  %v341_v31 = vmul.f32 0.70710677, %v1173_v12  ;;  %v430_v32 = vmul.f32 %v398_v26, %v302_v25  ;;  %v309_v11 = vmul.f32 0.5, %v1173_v12 }
 0x167   :  { %v858_v0 = vpop.eup %857  ;;  %v399_v34 = vadd.f32 1.0, %v856_v30  ;;  %v342_v33 = vmul.f32 0.70710677, %v269_v29  ;;  %v272_v35 = vpop.f32.mrb[28].mxu0  ;;  %v310_v9 = vmul.f32 0.5, %v269_v29 }
 0x168   :  { %v400_v39 = vadd.f32 1.0, %v858_v0  ;;  %867 = verf.f32 %v341_v31  ;;  %v273_v40 = vadd.f32 %v272_v35, %v1073_v54  ;;  %v274_v21 = vpop.f32.mrb[29].mxu0  ;;  %591 = vmatprep.mubr.f32.mxu1 %v430_v32  ;;  %v1192_v31 = vld [vmem:[%s1229_s4] ss:$0 sm:$0xff] }
 0x169   :  { %869 = verf.f32 %v342_v33  ;;  %v275_v42 = vadd.f32 %v274_v21, %v1075_v55  ;;  %592 = vmatmul.mubr.f32.gmra.mrb[18].mxu1 %v429_v37  ;;  %v431_v47 = vmul.f32 %v399_v34, %v303_v41 }
 0x16a   :  { %v860_v43 = vpop.eup %859  ;;  %v343_v44 = vmul.f32 0.70710677, %v273_v40  ;;  %v432_v45 = vmul.f32 %v400_v39, %v304_v38  ;;  %v311_v19 = vmul.f32 0.5, %v273_v40 }
 0x16b   :  { %v862_v46 = vpop.eup %861  ;;  %v401_v48 = vadd.f32 1.0, %v860_v43  ;;  %v344_v49 = vmul.f32 0.70710677, %v275_v42  ;;  %v278_v51 = vpop.f32.mrb[30].mxu0  ;;  %v312_v18 = vmul.f32 0.5, %v275_v42 }
 0x16c   :  { %v402_v53 = vadd.f32 1.0, %v862_v46  ;;  %871 = verf.f32 %v343_v44  ;;  %v279_v56 = vadd.f32 %v278_v51, %v1073_v54  ;;  %v280_v57 = vpop.f32.mrb[31].mxu0  ;;  %596 = vmatprep.mubr.f32.mxu1 %v432_v45  ;;  %v307_v54 = vmul.f32 0.5, %v1163_v3 }
 0x16d   :  { %873 = verf.f32 %v344_v49  ;;  %v281_v58 = vadd.f32 %v280_v57, %v1075_v55  ;;  %597 = vmatmul.mubr.f32.gmra.mrb[20].mxu1 %v431_v47  ;;  %v433_v4 = vmul.f32 %v401_v48, %v305_v36 }
 0x16e   :  { %v864_v59 = vpop.eup %863  ;;  %v345_v60 = vmul.f32 0.70710677, %v279_v56  ;;  %v434_v61 = vmul.f32 %v402_v53, %v306_v52  ;;  %v313_v12 = vmul.f32 0.5, %v279_v56 }
 0x16f   :  { %v866_v62 = vpop.eup %865  ;;  %v403_v1 = vadd.f32 1.0, %v864_v59  ;;  %v346_v2 = vmul.f32 0.70710677, %v281_v58  ;;  %v314_v26 = vmul.f32 0.5, %v281_v58 }
 0x170   :  { %v404_v5 = vadd.f32 1.0, %v866_v62  ;;  %875 = verf.f32 %v345_v60  ;;  %601 = vmatprep.mubr.f32.mxu1 %v434_v61 }
 0x171   :  { %877 = verf.f32 %v346_v2  ;;  %602 = vmatmul.mubr.f32.gmra.mrb[22].mxu1 %v433_v4  ;;  %v435_v8 = vmul.f32 %v403_v1, %v307_v54 }
 0x172   :  { %v868_v50 = vpop.eup %867  ;;  %v436_v6 = vmul.f32 %v404_v5, %v308_v63 }
 0x173   :  { %v870_v55 = vpop.eup %869  ;;  %v405_v7 = vadd.f32 1.0, %v868_v50 }
 0x174   :  { %v406_v10 = vadd.f32 1.0, %v870_v55  ;;  %606 = vmatprep.mubr.f32.mxu1 %v436_v6 }
 0x175   :  { %607 = vmatmul.mubr.f32.gmra.mrb[24].mxu1 %v435_v8  ;;  %v437_v17 = vmul.f32 %v405_v7, %v309_v11 }
 0x176   :  { %v872_v13 = vpop.eup %871  ;;  %v438_v14 = vmul.f32 %v406_v10, %v310_v9 }
 0x177   :  { %v874_v15 = vpop.eup %873  ;;  %v407_v16 = vadd.f32 1.0, %v872_v13 }
 0x178   :  { %v408_v3 = vadd.f32 1.0, %v874_v15  ;;  %611 = vmatprep.mubr.f32.mxu1 %v438_v14 }
 0x179   :  { %612 = vmatmul.mubr.f32.gmra.mrb[26].mxu1 %v437_v17  ;;  %v439_v25 = vmul.f32 %v407_v16, %v311_v19 }
 0x17a   :  { %v876_v20 = vpop.eup %875  ;;  %v440_v22 = vmul.f32 %v408_v3, %v312_v18 }
 0x17b   :  { %v878_v23 = vpop.eup %877  ;;  %v409_v24 = vadd.f32 1.0, %v876_v20 }
 0x17c   :  { %v410_v27 = vadd.f32 1.0, %v878_v23  ;;  %616 = vmatprep.mubr.f32.mxu1 %v440_v22 }
 0x17d   :  { %617 = vmatmul.mubr.f32.gmra.mrb[28].mxu1 %v439_v25  ;;  %v441_v29 = vmul.f32 %v409_v24, %v313_v12 }
 0x17e   :  { %v442_v28 = vmul.f32 %v410_v27, %v314_v26 }
 0x180   :  { %621 = vmatprep.mubr.f32.mxu1 %v442_v28 }
 0x181   :  { %622 = vmatmul.mubr.f32.gmra.mrb[30].mxu1 %v441_v29 }
 0x218   :  { %v694_v30 = vpop.f32.mrb[0].mxu1 }
 0x219   :  { %v695_v32 = vpop.f32.mrb[1].mxu1 }
 0x21a   :  { %v696_v0 = vadd.f32 %v695_v32, %v694_v30 }
 0x21c   :  { %v549_v34 = vadd.f32 %v696_v0, %v1192_v31  ;;  %v697_v33 = vpop.f32.mrb[2].mxu1 }
 0x21d   :  { %v698_v35 = vpop.f32.mrb[3].mxu1 }
 0x21e   :  { %627 = vst [vmem:[#allocation8] sm:$0xff] %v549_v34  ;;  %v699_v37 = vadd.f32 %v698_v35, %v697_v33 }
 0x220   :  { %v554_v38 = vadd.f32 %v699_v37, %v1192_v31  ;;  %v700_v39 = vpop.f32.mrb[4].mxu1 }
 0x221   :  { %v701_v40 = vpop.f32.mrb[5].mxu1 }
 0x222   :  { %628 = vst [vmem:[#allocation8 + $0x8] sm:$0xff] %v554_v38  ;;  %v702_v21 = vadd.f32 %v701_v40, %v700_v39 }
 0x224   :  { %v559_v41 = vadd.f32 %v702_v21, %v1192_v31  ;;  %v703_v42 = vpop.f32.mrb[6].mxu1 }
 0x225   :  { %v704_v43 = vpop.f32.mrb[7].mxu1 }
 0x226   :  { %629 = vst [vmem:[#allocation8 + $0x10] sm:$0xff] %v559_v41  ;;  %v705_v44 = vadd.f32 %v704_v43, %v703_v42 }
 0x228   :  { %v564_v45 = vadd.f32 %v705_v44, %v1192_v31  ;;  %v706_v46 = vpop.f32.mrb[8].mxu1 }
 0x229   :  { %v707_v48 = vpop.f32.mrb[9].mxu1 }
 0x22a   :  { %630 = vst [vmem:[#allocation8 + $0x18] sm:$0xff] %v564_v45  ;;  %v708_v49 = vadd.f32 %v707_v48, %v706_v46 }
 0x22c   :  { %v569_v51 = vadd.f32 %v708_v49, %v1192_v31  ;;  %v709_v47 = vpop.f32.mrb[10].mxu1 }
 0x22d   :  { %v710_v52 = vpop.f32.mrb[11].mxu1 }
 0x22e   :  { %631 = vst [vmem:[#allocation8 + $0x20] sm:$0xff] %v569_v51  ;;  %v711_v53 = vadd.f32 %v710_v52, %v709_v47 }
 0x230   :  { %v574_v56 = vadd.f32 %v711_v53, %v1192_v31  ;;  %v712_v57 = vpop.f32.mrb[12].mxu1 }
 0x231   :  { %v713_v36 = vpop.f32.mrb[13].mxu1 }
 0x232   :  { %632 = vst [vmem:[#allocation8 + $0x28] sm:$0xff] %v574_v56  ;;  %v714_v58 = vadd.f32 %v713_v36, %v712_v57 }
 0x234   :  { %v579_v59 = vadd.f32 %v714_v58, %v1192_v31  ;;  %v715_v60 = vpop.f32.mrb[14].mxu1 }
 0x235   :  { %v716_v61 = vpop.f32.mrb[15].mxu1 }
 0x236   :  { %633 = vst [vmem:[#allocation8 + $0x30] sm:$0xff] %v579_v59  ;;  %v717_v62 = vadd.f32 %v716_v61, %v715_v60 }
 0x238   :  { %v584_v1 = vadd.f32 %v717_v62, %v1192_v31  ;;  %v718_v2 = vpop.f32.mrb[16].mxu1 }
 0x239   :  { %v719_v4 = vpop.f32.mrb[17].mxu1 }
 0x23a   :  { %634 = vst [vmem:[#allocation8 + $0x38] sm:$0xff] %v584_v1  ;;  %v720_v63 = vadd.f32 %v719_v4, %v718_v2 }
 0x23c   :  { %v589_v5 = vadd.f32 %v720_v63, %v1192_v31  ;;  %v721_v54 = vpop.f32.mrb[18].mxu1 }
 0x23d   :  { %v722_v50 = vpop.f32.mrb[19].mxu1 }
 0x23e   :  { %635 = vst [vmem:[#allocation8 + $0x40] sm:$0xff] %v589_v5  ;;  %v723_v6 = vadd.f32 %v722_v50, %v721_v54 }
 0x240   :  { %v594_v55 = vadd.f32 %v723_v6, %v1192_v31  ;;  %v724_v7 = vpop.f32.mrb[20].mxu1 }
 0x241   :  { %v725_v8 = vpop.f32.mrb[21].mxu1 }
 0x242   :  { %636 = vst [vmem:[#allocation8 + $0x48] sm:$0xff] %v594_v55  ;;  %v726_v9 = vadd.f32 %v725_v8, %v724_v7 }
 0x244   :  { %v599_v10 = vadd.f32 %v726_v9, %v1192_v31  ;;  %v727_v11 = vpop.f32.mrb[22].mxu1 }
 0x245   :  { %v728_v13 = vpop.f32.mrb[23].mxu1 }
 0x246   :  { %637 = vst [vmem:[#allocation8 + $0x50] sm:$0xff] %v599_v10  ;;  %v729_v14 = vadd.f32 %v728_v13, %v727_v11 }
 0x248   :  { %v604_v15 = vadd.f32 %v729_v14, %v1192_v31  ;;  %v730_v16 = vpop.f32.mrb[24].mxu1 }
 0x249   :  { %v731_v17 = vpop.f32.mrb[25].mxu1 }
 0x24a   :  { %638 = vst [vmem:[#allocation8 + $0x58] sm:$0xff] %v604_v15  ;;  %v732_v18 = vadd.f32 %v731_v17, %v730_v16 }
 0x24c   :  { %v609_v3 = vadd.f32 %v732_v18, %v1192_v31  ;;  %v733_v19 = vpop.f32.mrb[26].mxu1 }
 0x24d   :  { %v734_v20 = vpop.f32.mrb[27].mxu1 }
 0x24e   :  { %639 = vst [vmem:[#allocation8 + $0x60] sm:$0xff] %v609_v3  ;;  %v735_v22 = vadd.f32 %v734_v20, %v733_v19 }
 0x250   :  { %v614_v23 = vadd.f32 %v735_v22, %v1192_v31  ;;  %v736_v24 = vpop.f32.mrb[28].mxu1 }
 0x251   :  { %v737_v25 = vpop.f32.mrb[29].mxu1 }
 0x252   :  { %640 = vst [vmem:[#allocation8 + $0x68] sm:$0xff] %v614_v23  ;;  %v738_v26 = vadd.f32 %v737_v25, %v736_v24 }
 0x254   :  { %v619_v27 = vadd.f32 %v738_v26, %v1192_v31  ;;  %v739_v12 = vpop.f32.mrb[30].mxu1 }
 0x255   :  { %v740_v28 = vpop.f32.mrb[31].mxu1 }
 0x256   :  { %641 = vst [vmem:[#allocation8 + $0x70] sm:$0xff] %v619_v27  ;;  %v741_v29 = vadd.f32 %v740_v28, %v739_v12 }
 0x258   :  { %v624_v30 = vadd.f32 %v741_v29, %v1192_v31 }
 0x25a   :  { %642 = vst [vmem:[#allocation8 + $0x78] sm:$0xff] %v624_v30 }
 0x25b   :  { %647 = vsyncadd [#allocation4], 1536  ;;  %s981_s4 = smov [#allocation8]  }
 0x25c   :  { %s648_s9 = sshll.u32 %s981_s4, 4  ;;  %s649_s9 = int_to_ptr.vmem [resolvable:$true] %s648_s9 }
 0x25d   :  { %s945_s10 = scalar_lea.vmem %s649_s9, 512  ;;  %s949_s11 = scalar_lea.vmem %s649_s9, 2048 }
 0x25e   :  { %p946_p10 = scmp.ne.s32.totalorder %s649_s9, %s945_s10  ;;  %p950_p11 = scmp.lt.s32.totalorder %s649_s9, %s649_s9 }
 0x25f   :  { %p951_p12 = scmp.lt.s32.totalorder %s949_s11, %s945_s10 }
 0x261   :  { %p952_p13 = por %p951_p12, %p950_p11 }
 0x263   :  { %p953_p0 = pnand %p952_p13, %p946_p10 }
 0x265   :  { %956 = shalt.err (!%p953_p0)
}
 0x266   :  { %s957_s14 = scalar_lea.hbm %s1230_s5, 512 }
 0x267   :  { %p958_p1 = scmp.ne.s32.totalorder %s1230_s5, %s957_s14  ;;  %p961_p2 = scmp.lt.u32.totalorder %s957_s14, %s1230_s5 }
 0x269   :  { %p963_p3 = pnand %p961_p2, %p958_p1 }
 0x26b   :  { %966 = shalt.err (!%p963_p3)
}
 0x26c   :  { %654 = dma.vmem_to_hbm [thread:$0]  %s649_s9, 512, %s1230_s5, [#allocation4], %s977_s17, %s977_s17, %s978_s18  }
 0x26d   :  { %971 = dma.done.wait [#allocation4], 2048  }
 0x26e   :  { %972 = vsyncadd [#allocation4], 4294965248 }
 0x26f   :  { %658 = vsyncpa [#allocation3], 1 }
 0x270   :  { %659 = vsyncpa [#allocation6], 1 }
 0x271   :  { %660 = vsyncpa [#allocation4], 1 }

</bundles_post_ra>
